<compile_context>
chip_gen: v7x
topology: tpu7x:2x2x1
jax: 0.10.0
libtpu: 0.0.40
codegen_flags: <defaults>
</compile_context>

<pallas_src>
import functools

import jax
import jax.numpy as jnp
import numpy as np
from jax.experimental import pallas as pl
from jax.experimental.pallas import tpu as pltpu


# ------------------------------ projection kernel ------------------------------

def _rgat_project_kernel(x_ref, w_ref, al_ref, ar_ref, z_ref, elT_ref, erT_ref,
                         *, num_heads, head_dim):
    """Per (relation, node_tile): projection + per-head attention scores.

    x_ref   : [node_t, F_in]   bf16
    w_ref   : [F_in, H*D]      bf16
    al_ref  : [H, H*D]         bf16  (block-diag packed a_l rows)
    ar_ref  : [H, H*D]         bf16  (block-diag packed a_r rows)
    z_ref   : [H, node_t, D]   bf16 out (head-major)
    elT_ref : [H, node_t]      f32 out  (source-side scores, node on the lane axis)
    erT_ref : [H, node_t]      f32 out  (destination-side scores, lane-dense)
    """
    H, D = num_heads, head_dim
    z = jnp.dot(x_ref[...], w_ref[...], preferred_element_type=jnp.float32)
    z_bf = z.astype(jnp.bfloat16)
    # All heads at once, single-pass bf16 MXU:  elT[h, n] = sum_f al[h, f] * z[n, f]
    elT_ref[...] = jax.lax.dot_general(
        al_ref[...], z_bf, (((1,), (1,)), ((), ())),
        preferred_element_type=jnp.float32)
    erT_ref[...] = jax.lax.dot_general(
        ar_ref[...], z_bf, (((1,), (1,)), ((), ())),
        preferred_element_type=jnp.float32)
    # Head-major z so the attention hot loop reads z_ref[h] (leading-axis index)
    # instead of a sub-128-lane slice.  The lane slice below is projection-side only.
    for h in range(H):
        z_ref[h] = z_bf[:, h * D:(h + 1) * D]


# ------------------------------ attention kernel --------------------------------

def _rgat_attn_kernel(flags_ref, fetch_ref, erT_ref, elT_ref, z_ref, adj_ref, out_ref,
                      m_s, l_s, acc_s,
                      *, num_heads, head_dim, negative_slope, apply_elu,
                      n_rel, n_src_tiles):
    """Grid = (dst_tile, relation, src_tile); online softmax over src tiles.

    flags_ref : SMEM int32 [n_dst*n_rel*n_src]  1 iff the (d,r,s) adjacency tile has edges
    fetch_ref : SMEM int32 [n_dst*n_rel*n_src]  src block index to DMA (used by the
                index_maps only; empty tiles repeat a neighbouring nonzero index so
                the adjacency/z/elT DMAs are elided)
    erT_ref   : [H, dst_t]     f32
    elT_ref   : [H, src_t]     f32
    z_ref     : [H, src_t, D]  bf16 (head-major)
    adj_ref   : [dst_t, src_t] int8 (0/1 incoming-edge mask)
    out_ref   : [dst_t, H*D]   f32, accumulated over the relation axis
    m_s, l_s  : [H, dst_t, 1]  f32 scratch (running max / running denom)
    acc_s     : [H, dst_t, D]  f32 scratch (running numerator, head-major)
    """
    del fetch_ref  # only consumed by the index_maps
    d = pl.program_id(0)
    r = pl.program_id(1)
    s = pl.program_id(2)
    H, D = num_heads, head_dim

    @pl.when((r == 0) & (s == 0))
    def _zero_output():
        out_ref[...] = jnp.zeros_like(out_ref)

    @pl.when(s == 0)
    def _init_relation():
        m_s[...] = jnp.full_like(m_s, -1e30)
        l_s[...] = jnp.zeros_like(l_s)
        acc_s[...] = jnp.zeros_like(acc_s)

    flag = flags_ref[(d * n_rel + r) * n_src_tiles + s]

    @pl.when(flag != 0)
    def _accumulate():
        mask = adj_ref[...] != 0                               # [dst_t, src_t] (int8 cmp)
        er_cols = jnp.transpose(erT_ref[...], (1, 0))          # [dst_t, H], one XLU op
        # TODO(synk): on v6e/v7x the sc/exp/p path could run in bf16 (bf16 VPU/EUP);
        # kept f32 so the identical code stays correct and fast on v5e.
        # TODO(synk): switch to lax.fori_loop(..., unroll=True) + pl.ds if H grows > 4.
        for h in range(H):
            el_row = elT_ref[h:h + 1, :]                       # [1, src_t]
            er_col = er_cols[:, h:h + 1]                       # [dst_t, 1]
            sc = er_col + el_row                               # [dst_t, src_t]
            sc = jnp.where(sc > 0.0, sc, negative_slope * sc)  # LeakyReLU
            sc = jnp.where(mask, sc, -1e30)                    # masked running max
            m_prev = m_s[h]                                    # [dst_t, 1]
            m_new = jnp.maximum(m_prev, jnp.max(sc, axis=-1, keepdims=True))
            p = jnp.where(mask, jnp.exp(sc - m_new), 0.0)      # unnormalized probs
            scale = jnp.exp(m_prev - m_new)                    # [dst_t, 1]
            l_s[h] = scale * l_s[h] + jnp.sum(p, axis=-1, keepdims=True)
            acc_s[h] = scale * acc_s[h] + jnp.dot(
                p.astype(jnp.bfloat16), z_ref[h], preferred_element_type=jnp.float32)
            m_s[h] = m_new

    @pl.when(s == n_src_tiles - 1)
    def _finalize_relation():
        # Deferred softmax normalization: one approx EUP reciprocal per (head, dst);
        # l == 0 (zero in-degree) -> contributes 0, not NaN (intentional divergence
        # from a NaN-producing dense softmax; these graphs carry self-loops).
        inv_l = pl.reciprocal(jnp.maximum(l_s[...], 1e-20), approx=True)  # [H,dst_t,1]
        out_v = jnp.concatenate([acc_s[h] * inv_l[h] for h in range(H)], axis=-1)
        if apply_elu:
            out_v = jnp.where(out_v > 0.0, out_v,
                              jnp.expm1(jnp.minimum(out_v, 0.0)))
        out_ref[...] = out_ref[...] + out_v                    # HeteroGraphConv 'sum'


# --------------------------------- wrappers -------------------------------------

def _pack_heads(a):
    """[R, H, D] -> [R, H, H*D]; row h holds a[:, h, :] in the head-h column block."""
    R, H, D = a.shape
    eye = jnp.eye(H, dtype=a.dtype)
    return (a[:, :, None, :] * eye[None, :, :, None]).reshape(R, H, H * D)


def _pick_tile(n, target):
    t = max(128, min(int(target), int(n)))
    t = (t // 128) * 128
    while n % t:
        t -= 128
    return t


def _vmem_limit_bytes():
    """~96 MiB on 128-MiB-VMEM chips (v5e/v6e), ~48 MiB on v7x (64 MiB VMEM)."""
    try:
        cap = pltpu.get_tpu_info().vmem_capacity_bytes
    except Exception:
        cap = 64 * 1024 * 1024
    return int(min(96 * 1024 * 1024, (cap * 3) // 4))


def _prepare_adjacency(adj_t, dst_tile, src_tile):
    """One-time (shared by both layers) adjacency prep.

    Returns int8 edge mask, per-(d,r,s)-tile nonzero flags and DMA-fetch indices
    (empty tiles repeat a neighbouring nonzero src-tile index so the DMA is elided).
    """
    R, N, _ = adj_t.shape
    N_pad = ((N + 127) // 128) * 128
    if N_pad != N:
        adj_t = jnp.pad(adj_t, ((0, 0), (0, N_pad - N), (0, N_pad - N)))
    dst_t = _pick_tile(N_pad, dst_tile)
    src_t = _pick_tile(N_pad, src_tile)
    n_dst, n_src = N_pad // dst_t, N_pad // src_t

    edge = adj_t != 0
    adj_i8 = edge.astype(jnp.int8)                    # 0/1, half the bytes of bf16
    tile_nz = edge.reshape(R, n_dst, dst_t, n_src, src_t).any(axis=(2, 4))
    nz = jnp.transpose(tile_nz, (1, 0, 2))            # [n_dst, R, n_src] (grid order)
    flags = nz.astype(jnp.int32).reshape(-1)

    s_ids = jnp.arange(n_src, dtype=jnp.int32)[None, None, :]
    nxt = jax.lax.cummin(jnp.where(nz, s_ids, jnp.int32(n_src)), axis=2, reverse=True)
    prv = jax.lax.cummax(jnp.where(nz, s_ids, jnp.int32(-1)), axis=2)
    fetch = jnp.where(nxt < n_src, nxt, jnp.maximum(prv, 0)).astype(jnp.int32)
    fetch = fetch.reshape(-1)

    return dict(adj=adj_i8, flags=flags, fetch=fetch, R=R, N=N, N_pad=N_pad,
                dst_t=dst_t, src_t=src_t, n_dst=n_dst, n_src=n_src)


def rgat_layer(x, adj_pack, w, a_l, a_r, *, negative_slope, apply_elu, node_tile=512):
    """x: [N, F_in]; adj_pack: see _prepare_adjacency; w: [R, F_in, H*D];
    a_l/a_r: [R, H, D]."""
    R, N, N_pad = adj_pack["R"], adj_pack["N"], adj_pack["N_pad"]
    dst_t, src_t = adj_pack["dst_t"], adj_pack["src_t"]
    n_dst, n_src = adj_pack["n_dst"], adj_pack["n_src"]
    H, D = a_l.shape[1], a_l.shape[2]
    HD = H * D
    F_in = x.shape[1]

    if N_pad != N:
        x = jnp.pad(x, ((0, N_pad - N), (0, 0)))
    node_t = _pick_tile(N_pad, node_tile)
    n_node = N_pad // node_t

    al_pack = _pack_heads(a_l).astype(jnp.bfloat16)   # [R, H, H*D]
    ar_pack = _pack_heads(a_r).astype(jnp.bfloat16)   # [R, H, H*D]
    x_bf = x.astype(jnp.bfloat16)
    w_bf = w.astype(jnp.bfloat16)
    vmem_limit = _vmem_limit_bytes()

    # --------------- 1) projection + packed elT/erT, once per relation --------------
    proj_kernel = functools.partial(_rgat_project_kernel, num_heads=H, head_dim=D)
    z, elT, erT = pl.pallas_call(
        proj_kernel,
        out_shape=(
            jax.ShapeDtypeStruct((R, H, N_pad, D), jnp.bfloat16),
            jax.ShapeDtypeStruct((R, H, N_pad), jnp.float32),
            jax.ShapeDtypeStruct((R, H, N_pad), jnp.float32),
        ),
        grid_spec=pltpu.PrefetchScalarGridSpec(
            num_scalar_prefetch=0,
            grid=(R, n_node),
            in_specs=[
                pl.BlockSpec((node_t, F_in), lambda r, n: (n, 0)),
                pl.BlockSpec((pl.Squeezed(), F_in, HD), lambda r, n: (r, 0, 0)),
                pl.BlockSpec((pl.Squeezed(), H, HD), lambda r, n: (r, 0, 0)),
                pl.BlockSpec((pl.Squeezed(), H, HD), lambda r, n: (r, 0, 0)),
            ],
            out_specs=[
                pl.BlockSpec((pl.Squeezed(), H, node_t, D), lambda r, n: (r, 0, n, 0)),
                pl.BlockSpec((pl.Squeezed(), H, node_t), lambda r, n: (r, 0, n)),
                pl.BlockSpec((pl.Squeezed(), H, node_t), lambda r, n: (r, 0, n)),
            ],
        ),
        compiler_params=pltpu.CompilerParams(
            dimension_semantics=("parallel", "parallel"),
            vmem_limit_bytes=vmem_limit),
    )(x_bf, w_bf, al_pack, ar_pack)

    # --------------- 2) tiled attention / aggregation (online softmax) -------------
    attn_kernel = functools.partial(
        _rgat_attn_kernel,
        num_heads=H, head_dim=D, negative_slope=negative_slope,
        apply_elu=apply_elu, n_rel=R, n_src_tiles=n_src)

    def _soff(d, r, s, fetch_ref):
        # src block index to fetch; empty tiles repeat a neighbouring nonzero index
        # so the DMA is elided (the kernel never reads those refs when flag == 0).
        return fetch_ref[(d * R + r) * n_src + s]

    out = pl.pallas_call(
        attn_kernel,
        out_shape=jax.ShapeDtypeStruct((N_pad, HD), jnp.float32),
        grid_spec=pltpu.PrefetchScalarGridSpec(
            num_scalar_prefetch=2,
            grid=(n_dst, R, n_src),
            in_specs=[
                pl.BlockSpec((pl.Squeezed(), H, dst_t),
                             lambda d, r, s, fl, ft: (r, 0, d)),
                pl.BlockSpec((pl.Squeezed(), H, src_t),
                             lambda d, r, s, fl, ft: (r, 0, _soff(d, r, s, ft))),
                pl.BlockSpec((pl.Squeezed(), H, src_t, D),
                             lambda d, r, s, fl, ft: (r, 0, _soff(d, r, s, ft), 0)),
                pl.BlockSpec((pl.Squeezed(), dst_t, src_t),
                             lambda d, r, s, fl, ft: (r, d, _soff(d, r, s, ft))),
            ],
            out_specs=pl.BlockSpec((dst_t, HD), lambda d, r, s, fl, ft: (d, 0)),
            scratch_shapes=[
                pltpu.VMEM((H, dst_t, 1), jnp.float32),   # running max  m
                pltpu.VMEM((H, dst_t, 1), jnp.float32),   # running denom l
                pltpu.VMEM((H, dst_t, D), jnp.float32),   # running numerator (head-major)
            ],
        ),
        compiler_params=pltpu.CompilerParams(
            # TODO(synk): on v7x verify the dst axis actually shards across both
            # TensorCores; if not, switch to pltpu.CORE_PARALLEL / explicit core_map.
            dimension_semantics=("parallel", "arbitrary", "arbitrary"),
            vmem_limit_bytes=vmem_limit),
    )(adj_pack["flags"], adj_pack["fetch"], erT, elT, z, adj_pack["adj"])

    return out[:N]


def rgat_forward(x, adj_t, params, *, negative_slope, dst_tile=512, src_tile=2048):
    """Two-layer RGAT forward (num_layers == 2), mirroring the PyTorch module."""
    (w0, al0, ar0), (w1, al1, ar1) = params
    # Adjacency-derived data (int8 mask, tile flags, DMA-skip fetch indices) is
    # computed ONCE here and shared by both layers (single O(R*N^2) pass).
    adj_pack = _prepare_adjacency(adj_t, dst_tile, src_tile)
    # layer 0: ELU inside GATConv, sum over relations, flatten heads.
    h = rgat_layer(x, adj_pack, w0, al0, ar0, negative_slope=negative_slope,
                   apply_elu=True)
    # layer 1: no activation, sum over relations, mean over heads.
    h = rgat_layer(h, adj_pack, w1, al1, ar1, negative_slope=negative_slope,
                   apply_elu=False)
    H1, out_dim = al1.shape[1], al1.shape[2]
    return h.reshape(h.shape[0], H1, out_dim).mean(axis=1)


# -------------------- pure-JAX reference (for correctness check) --------------------

def _rgat_layer_ref(x, adj_t, w, a_l, a_r, negative_slope, apply_elu):
    R, N, _ = adj_t.shape
    H, D = a_l.shape[1], a_l.shape[2]
    out = jnp.zeros((N, H, D), jnp.float32)
    for r in range(R):
        z = (x @ w[r]).reshape(N, H, D)
        el = (z * a_l[r][None]).sum(-1)                 # [N_src, H]
        er = (z * a_r[r][None]).sum(-1)                 # [N_dst, H]
        s = er[:, None, :] + el[None, :, :]             # [dst, src, H]
        s = jnp.where(s > 0, s, negative_slope * s)
        mask = adj_t[r][:, :, None] > 0
        s = jnp.where(mask, s, -1e30)
        s = s - s.max(axis=1, keepdims=True)
        p = jnp.exp(s) * adj_t[r][:, :, None]
        alpha = p / p.sum(axis=1, keepdims=True)
        o = jnp.einsum('dsh,shf->dhf', alpha, z)
        if apply_elu:
            o = jnp.where(o > 0, o, jnp.expm1(o))
        out = out + o
    return out.reshape(N, H * D)


def rgat_forward_ref(x, adj_t, params, *, negative_slope):
    (w0, al0, ar0), (w1, al1, ar1) = params
    h = _rgat_layer_ref(x, adj_t, w0, al0, ar0, negative_slope, True)
    h = _rgat_layer_ref(h, adj_t, w1, al1, ar1, negative_slope, False)
    H1, out_dim = al1.shape[1], al1.shape[2]
    return h.reshape(h.shape[0], H1, out_dim).mean(axis=1)


if __name__ == "__main__":
    # Small, module-consistent shapes (big enough to exercise the tiling paths).
    N = 256           # number of nodes
    R = 2             # number of relations (rel_names)
    in_dim = 32
    num_hidden = 16
    out_dim = 32
    heads = (2, 2)
    negative_slope = 0.2

    key = jax.random.PRNGKey(0)
    k_x, k_adj, k_w0, k_a0, k_w1, k_a1 = jax.random.split(key, 6)

    x = jax.random.normal(k_x, (N, in_dim), jnp.float32)

    # Dense per-relation adjacency [R, N_dst, N_src] with guaranteed self-loops.
    adj_t = jax.random.bernoulli(k_adj, 0.15, (R, N, N)).astype(jnp.float32)
    # Empty one off-diagonal 128x128 block of relation 1 so that with 128-sized tiles
    # the empty-tile compute-skip AND DMA-skip paths are actually exercised.
    adj_t = adj_t.at[1, 128:, :128].set(0.0)
    adj_t = jnp.clip(adj_t + jnp.eye(N, dtype=jnp.float32)[None], 0.0, 1.0)

    # Deterministic parameters (GATConv fc weight + attn_l/attn_r per relation).
    w0 = 0.1 * jax.random.normal(k_w0, (R, in_dim, heads[0] * num_hidden), jnp.float32)
    al0 = 0.1 * jax.random.normal(k_a0, (R, heads[0], num_hidden), jnp.float32)
    ar0 = 0.1 * jax.random.normal(jax.random.fold_in(k_a0, 1),
                                  (R, heads[0], num_hidden), jnp.float32)
    w1 = 0.1 * jax.random.normal(k_w1, (R, heads[0] * num_hidden, heads[1] * out_dim),
                                 jnp.float32)
    al1 = 0.1 * jax.random.normal(k_a1, (R, heads[1], out_dim), jnp.float32)
    ar1 = 0.1 * jax.random.normal(jax.random.fold_in(k_a1, 1),
                                  (R, heads[1], out_dim), jnp.float32)

    params = ((w0, al0, ar0), (w1, al1, ar1))
    # TODO(synk): fc1/fc2 belong to project(), not forward(); not implemented here.

    # 128-sized dst/src tiles -> grid (2, 2, 2): exercises the online softmax across
    # multiple src tiles, relation accumulation, and the empty-tile skip paths.
    out = rgat_forward(x, adj_t, params, negative_slope=negative_slope,
                       dst_tile=128, src_tile=128)
    out = jax.block_until_ready(out)

    ref = rgat_forward_ref(x, adj_t, params, negative_slope=negative_slope)
    ref = jax.block_until_ready(ref)

    np.testing.assert_allclose(np.asarray(out), np.asarray(ref), rtol=2e-2, atol=2e-2)
    assert out.shape == (N, out_dim)
    print("KERNEL_OK")
</pallas_src>

<mosaic_0001>
module attributes {stable_mosaic.version = 11 : i64} {
  func.func @_rgat_project_kernel(%arg0: i32, %arg1: i32, %arg2: memref<256x32xbf16, #tpu.memory_space<vmem>>, %arg3: memref<1x32x32xbf16, #tpu.memory_space<vmem>>, %arg4: memref<1x2x32xbf16, #tpu.memory_space<vmem>>, %arg5: memref<1x2x32xbf16, #tpu.memory_space<vmem>>, %arg6: memref<1x2x256x16xbf16, #tpu.memory_space<vmem>>, %arg7: memref<1x2x256xf32, #tpu.memory_space<vmem>>, %arg8: memref<1x2x256xf32, #tpu.memory_space<vmem>>) attributes {dimension_semantics = [#tpu.dimension_semantics<parallel>, #tpu.dimension_semantics<parallel>], iteration_bounds = array<i64: 2, 1>, scalar_prefetch = 0 : i64, scratch_operands = 0 : i64, tpu.core_type = #tpu.core_type<tc>, window_params = [{transform_indices = @transform_0, window_bounds = array<i64: 256, 32>}, {transform_indices = @transform_1, window_bounds = array<i64: 1, 32, 32>}, {transform_indices = @transform_2, window_bounds = array<i64: 1, 2, 32>}, {transform_indices = @transform_3, window_bounds = array<i64: 1, 2, 32>}, {transform_indices = @transform_4, window_bounds = array<i64: 1, 2, 256, 16>}, {transform_indices = @transform_5, window_bounds = array<i64: 1, 2, 256>}, {transform_indices = @transform_6, window_bounds = array<i64: 1, 2, 256>}]} {
    %c0 = arith.constant 0 : index
    %c0_0 = arith.constant 0 : index
    %0 = vector.load %arg2[%c0, %c0_0] : memref<256x32xbf16, #tpu.memory_space<vmem>>, vector<256x32xbf16>
    %c0_1 = arith.constant 0 : index
    %c0_2 = arith.constant 0 : index
    %c0_3 = arith.constant 0 : index
    %1 = vector.load %arg3[%c0_1, %c0_2, %c0_3] : memref<1x32x32xbf16, #tpu.memory_space<vmem>>, vector<1x32x32xbf16>
    %2 = vector.shape_cast %1 : vector<1x32x32xbf16> to vector<32x32xbf16>
    %cst = arith.constant dense<0.000000e+00> : vector<256x32xf32>
    %3 = tpu.matmul %0, %2, %cst {dimension_numbers = #tpu.dot_dimension_numbers<[1], [0], [0], [1], [0, 0, 1, 1], [], []>} : vector<256x32xbf16>, vector<32x32xbf16>, vector<256x32xf32> -> vector<256x32xf32>
    %4 = arith.truncf %3 : vector<256x32xf32> to vector<256x32xbf16>
    %c0_4 = arith.constant 0 : index
    %c0_5 = arith.constant 0 : index
    %c0_6 = arith.constant 0 : index
    %5 = vector.load %arg4[%c0_4, %c0_5, %c0_6] : memref<1x2x32xbf16, #tpu.memory_space<vmem>>, vector<1x2x32xbf16>
    %6 = vector.shape_cast %5 : vector<1x2x32xbf16> to vector<2x32xbf16>
    %cst_7 = arith.constant dense<0.000000e+00> : vector<2x256xf32>
    %7 = tpu.matmul %6, %4, %cst_7 {dimension_numbers = #tpu.dot_dimension_numbers<[1], [1], [0], [0], [0, 0, 1, 0], [], []>} : vector<2x32xbf16>, vector<256x32xbf16>, vector<2x256xf32> -> vector<2x256xf32>
    %c0_8 = arith.constant 0 : index
    %c0_9 = arith.constant 0 : index
    %c0_10 = arith.constant 0 : index
    %8 = vector.load %arg7[%c0_8, %c0_9, %c0_10] : memref<1x2x256xf32, #tpu.memory_space<vmem>>, vector<1x2x256xf32>
    %9 = vector.shape_cast %8 : vector<1x2x256xf32> to vector<2x256xf32>
    %10 = vector.shape_cast %7 : vector<2x256xf32> to vector<1x2x256xf32>
    tpu.vector_store %arg7[%c0_8, %c0_9, %c0_10], %10 {strides = array<i32>} : memref<1x2x256xf32, #tpu.memory_space<vmem>>, vector<1x2x256xf32>,
    %c0_11 = arith.constant 0 : index
    %c0_12 = arith.constant 0 : index
    %c0_13 = arith.constant 0 : index
    %11 = vector.load %arg5[%c0_11, %c0_12, %c0_13] : memref<1x2x32xbf16, #tpu.memory_space<vmem>>, vector<1x2x32xbf16>
    %12 = vector.shape_cast %11 : vector<1x2x32xbf16> to vector<2x32xbf16>
    %cst_14 = arith.constant dense<0.000000e+00> : vector<2x256xf32>
    %13 = tpu.matmul %12, %4, %cst_14 {dimension_numbers = #tpu.dot_dimension_numbers<[1], [1], [0], [0], [0, 0, 1, 0], [], []>} : vector<2x32xbf16>, vector<256x32xbf16>, vector<2x256xf32> -> vector<2x256xf32>
    %c0_15 = arith.constant 0 : index
    %c0_16 = arith.constant 0 : index
    %c0_17 = arith.constant 0 : index
    %14 = vector.load %arg8[%c0_15, %c0_16, %c0_17] : memref<1x2x256xf32, #tpu.memory_space<vmem>>, vector<1x2x256xf32>
    %15 = vector.shape_cast %14 : vector<1x2x256xf32> to vector<2x256xf32>
    %16 = vector.shape_cast %13 : vector<2x256xf32> to vector<1x2x256xf32>
    tpu.vector_store %arg8[%c0_15, %c0_16, %c0_17], %16 {strides = array<i32>} : memref<1x2x256xf32, #tpu.memory_space<vmem>>, vector<1x2x256xf32>,
    %17 = vector.extract_strided_slice %4 {offsets = [0, 0], sizes = [256, 16], strides = [1, 1]} : vector<256x32xbf16> to vector<256x16xbf16>
    %c0_18 = arith.constant 0 : index
    %c0_19 = arith.constant 0 : index
    %c0_20 = arith.constant 0 : index
    %c0_21 = arith.constant 0 : index
    %18 = vector.load %arg6[%c0_18, %c0_19, %c0_20, %c0_21] : memref<1x2x256x16xbf16, #tpu.memory_space<vmem>>, vector<1x1x256x16xbf16>
    %19 = vector.shape_cast %18 : vector<1x1x256x16xbf16> to vector<256x16xbf16>
    %20 = vector.shape_cast %17 : vector<256x16xbf16> to vector<1x1x256x16xbf16>
    tpu.vector_store %arg6[%c0_18, %c0_19, %c0_20, %c0_21], %20 {strides = array<i32>} : memref<1x2x256x16xbf16, #tpu.memory_space<vmem>>, vector<1x1x256x16xbf16>,
    %21 = vector.extract_strided_slice %4 {offsets = [0, 16], sizes = [256, 16], strides = [1, 1]} : vector<256x32xbf16> to vector<256x16xbf16>
    %c0_22 = arith.constant 0 : index
    %c1 = arith.constant 1 : index
    %c0_23 = arith.constant 0 : index
    %c0_24 = arith.constant 0 : index
    %22 = vector.load %arg6[%c0_22, %c1, %c0_23, %c0_24] : memref<1x2x256x16xbf16, #tpu.memory_space<vmem>>, vector<1x1x256x16xbf16>
    %23 = vector.shape_cast %22 : vector<1x1x256x16xbf16> to vector<256x16xbf16>
    %24 = vector.shape_cast %21 : vector<256x16xbf16> to vector<1x1x256x16xbf16>
    tpu.vector_store %arg6[%c0_22, %c1, %c0_23, %c0_24], %24 {strides = array<i32>} : memref<1x2x256x16xbf16, #tpu.memory_space<vmem>>, vector<1x1x256x16xbf16>,
    return
  }
  func.func @transform_0(%arg0: i32, %arg1: i32) -> (i32, i32) {
    %c0_i32 = arith.constant 0 : i32
    %c0_i32_0 = arith.constant 0 : i32
    return %arg1, %c0_i32 : i32, i32
  }
  func.func @transform_1(%arg0: i32, %arg1: i32) -> (i32, i32, i32) {
    %c0_i32 = arith.constant 0 : i32
    %c0_i32_0 = arith.constant 0 : i32
    %c0_i32_1 = arith.constant 0 : i32
    return %arg0, %c0_i32, %c0_i32_0 : i32, i32, i32
  }
  func.func @transform_2(%arg0: i32, %arg1: i32) -> (i32, i32, i32) {
    %c0_i32 = arith.constant 0 : i32
    %c0_i32_0 = arith.constant 0 : i32
    %c0_i32_1 = arith.constant 0 : i32
    return %arg0, %c0_i32, %c0_i32_0 : i32, i32, i32
  }
  func.func @transform_3(%arg0: i32, %arg1: i32) -> (i32, i32, i32) {
    %c0_i32 = arith.constant 0 : i32
    %c0_i32_0 = arith.constant 0 : i32
    %c0_i32_1 = arith.constant 0 : i32
    return %arg0, %c0_i32, %c0_i32_0 : i32, i32, i32
  }
  func.func @transform_4(%arg0: i32, %arg1: i32) -> (i32, i32, i32, i32) {
    %c0_i32 = arith.constant 0 : i32
    %c0_i32_0 = arith.constant 0 : i32
    %c0_i32_1 = arith.constant 0 : i32
    return %arg0, %c0_i32, %arg1, %c0_i32_0 : i32, i32, i32, i32
  }
  func.func @transform_5(%arg0: i32, %arg1: i32) -> (i32, i32, i32) {
    %c0_i32 = arith.constant 0 : i32
    %c0_i32_0 = arith.constant 0 : i32
    return %arg0, %c0_i32, %arg1 : i32, i32, i32
  }
  func.func @transform_6(%arg0: i32, %arg1: i32) -> (i32, i32, i32) {
    %c0_i32 = arith.constant 0 : i32
    %c0_i32_0 = arith.constant 0 : i32
    return %arg0, %c0_i32, %arg1 : i32, i32, i32
  }
}

</mosaic_0001>

<bundles_post_ra>
// kernel: tpu_custom_call.1
= control target key start
LH: loop header
LB: loop body
LE: loop exit
PB: predicated region body
PF: predicated region fallthrough
CT: control target
= control target key end

     0   :  { %12 = vsyncpa [#allocation3], 0  ;;  %s2388_s0 = inlined_call_operand.vmem [shape: bf16[256,32], index: 0, kind: input, shape index: {}]   ;;  %s2389_s1 = inlined_call_operand.vmem [shape: bf16[2,32,32], index: 1, kind: input, shape index: {}]   ;;  %s2390_s2 = inlined_call_operand.vmem [shape: bf16[2,2,32], index: 2, kind: input, shape index: {}]   ;;  %s2391_s3 = inlined_call_operand.vmem [shape: bf16[2,2,32], index: 3, kind: input, shape index: {}]   ;;  %s2392_s4 = inlined_call_operand.vmem [shape: bf16[2,2,256,16], index: 4, kind: output, shape index: {0}]   ;;  %s2393_s5 = inlined_call_operand.hbm [shape: f32[2,2,256], index: 5, kind: output, shape index: {1}]   ;;  %s2394_s6 = inlined_call_operand.hbm [shape: f32[2,2,256], index: 6, kind: output, shape index: {2}]  }
   0x1   :  { %14 = vsyncpa [#allocation3 + $0x1], 0 }
   0x2   :  { %15 = vsyncpa [#allocation5], 0 }
   0x3   :  { %17 = vsyncpa [#allocation5 + $0x1], 0  ;;  %s1862_s21 = smov 0   ;;  %s1864_s22 = smov 0  }
   0x4   :  { %s1866_s23 = smov 0   ;;  %s1868_s24 = smov 0  }
   0x5   :  { %s1870_s25 = smov 0   ;;  %s1872_s26 = smov 0  }
   0x6 LB: > { %s1369_s27 = sadd.s32 4294967295, %s1822_s26   ;;  %s1370_s28 = sadd.s32 4294967294, %s1822_s26   ;;  %s1822_s26 = sphi %s1872_s26, %s23_s26   ;;  %s1818_s25 = sphi %s1870_s25, %s2401_s25   ;;  %s1814_s24 = sphi %s1868_s24, %s2400_s24   ;;  %s1810_s23 = sphi %s1866_s23, %s2399_s23   ;;  %s1806_s22 = sphi %s1864_s22, %s2398_s22   ;;  %s1802_s21 = sphi %s1862_s21, %s2397_s21  }
   0x7   : > { %s35_s29 = sadd.s32 1, %s1818_s25  ;;  %s176_s30 = sadd.s32 1, %s1810_s23 }
   0x8   : > { %p37_p0 = scmp.ge.s32.totalorder %s35_s29, 2  ;;  %p186_p1 = scmp.ne.s32.totalorder %s1810_s23, %s1806_s22 }
   0x9   : > { %p187_p2 = scmp.eq.s32.totalorder %s1369_s27, 1  ;;  %p192_p3 = scmp.ne.s32.totalorder %s1806_s22, %s1802_s21 }
   0xa   : > { %s2403_s29 = smov (%p37_p0, %s35_s29), 0  ;;  %p193_p5 = scmp.eq.s32.totalorder %s1370_s28, 1 }
   0xb   : > { %p1902_p4 = por %p187_p2, %p186_p1  ;;  %s171_s8 = ssub.s32 %s1818_s25, %s2403_s29 }
   0xc   : > { %p1374_p6 = scmp.ge.s32.totalorder %s1822_s26, 1  ;;  %p174_p7 = scmp.eq.s32.totalorder %s171_s8, 0 }
   0xd   : > { %p1909_p8 = por %p193_p5, %p192_p3  ;;  %p268_p9 = scmp.lt.s32.totalorder %s1822_s26, 3 }
   0xe   : > { %s1915_s10 = scalar_select %p174_p7, %s1810_s23, %s176_s30  }
   0xf   : > { %p269_p10 = pnand %p1374_p6, %p268_p9 }
  0x10   : > { %p329_p11 = scmp.lt.s32.totalorder (!%p269_p10), %s1814_s24, 1  ;;  %v1696_v0 = vld [vmem:[%s2388_s0] sm:$0xff] (!%p269_p10)   ;;  %vm481_vm0 = vcmask (!%p269_p10), 261120   ;;  %v1697_v3 = vld [vmem:[%s2388_s0 + $0x8] sm:$0xff] (!%p269_p10)   ;;  %v1698_v4 = vld [vmem:[%s2388_s0 + $0x10] sm:$0xff] (!%p269_p10)   ;;  %vm981_vm1 = vcmask (!%p269_p10), 125952  }
  0x11   : > { %272 = sbr.rel (%p269_p10) target bundleno = 602 (0x25a), region = 36  ;;  %1585 = vmatprep.mubr.msk.bf16.mxu0 (!%p269_p10), %vm481_vm0, %v1696_v0  ;;  %v1699_v5 = vld [vmem:[%s2388_s0 + $0x18] sm:$0xff] (!%p269_p10)   ;;  %v1700_v6 = vld [vmem:[%s2388_s0 + $0x20] sm:$0xff] (!%p269_p10)   ;;  %v1701_v7 = vld [vmem:[%s2388_s0 + $0x28] sm:$0xff] (!%p269_p10)   ;;  %s2304_s19 = sand.u32 (!%p269_p10), 1, %s1806_s22  }
  0x12   : > { %v1702_v8 = vld [vmem:[%s2388_s0 + $0x30] sm:$0xff] (!%p269_p10)   ;;  %v1703_v9 = vld [vmem:[%s2388_s0 + $0x38] sm:$0xff] (!%p269_p10)   ;;  %v1704_v10 = vld [vmem:[%s2388_s0 + $0x40] sm:$0xff] (!%p269_p10)   ;;  %s1375_s20 = sshll.u32 (!%p269_p10), %s2304_s19, 2  ;;  %s1525_s27 = sshll.u32 (!%p269_p10), %s1814_s24, 6 }
  0x13   : > { %v1705_v11 = vld [vmem:[%s2388_s0 + $0x48] sm:$0xff] (!%p269_p10)   ;;  %v1706_v12 = vld [vmem:[%s2388_s0 + $0x50] sm:$0xff] (!%p269_p10)   ;;  %v1707_v13 = vld [vmem:[%s2388_s0 + $0x58] sm:$0xff] (!%p269_p10)   ;;  %s315_s28 = scalar_lea.vmem (!%p269_p10), [#allocation2], %s1375_s20 }
  0x14   : > { %v1708_v14 = vld [vmem:[%s2388_s0 + $0x60] sm:$0xff] (!%p269_p10)   ;;  %v1709_v15 = vld [vmem:[%s2388_s0 + $0x68] sm:$0xff] (!%p269_p10)   ;;  %v1710_v16 = vld [vmem:[%s2388_s0 + $0x70] sm:$0xff] (!%p269_p10)   ;;  %s1178_s30 = sshll.u32 (!%p269_p10), %s315_s28, 4  ;;  %s2313_s30 = int_to_ptr.vmem [resolvable:$true] %s1178_s30 }
  0x15   : > { %v1711_v17 = vld [vmem:[%s2388_s0 + $0x78] sm:$0xff] (!%p269_p10)  }
  0x18   : > { %s1922_s13 = scalar_select %p329_p11, %s1814_s24, 1 }
  0x1a   : > { %s1491_s14 = sshll.u32 %s1922_s13, 4  ;;  %s336_s8 = scalar_lea.vmem %s2390_s2, %s1922_s13 }
  0x1b   : > { %s333_s17 = scalar_lea.vmem %s2389_s1, %s1491_s14  ;;  %s339_s14 = scalar_lea.vmem %s2391_s3, %s1922_s13  ;;  %v1997_v18 = vld [vmem:[%s336_s8] sm:$0x1] }
  0x1c   : > { %v1694_v1 = vld [vmem:[%s333_s17] sm:$0xff]   ;;  %v1695_v2 = vld [vmem:[%s333_s17 + $0x8] sm:$0xff]   ;;  %1561 = vmatprep.mubr.msk.bf16.mxu1 %vm481_vm0, %v1997_v18  ;;  %s1492_s15 = sshll.u32 %s1922_s13, 8  ;;  %s1824_s13 = smov 112  }
  0x1d   : > { %1581 = vmatprep.subr.bf16.mxu0 %v1694_v1  ;;  %v1999_v19 = vld [vmem:[%s339_s14] sm:$0x1]  ;;  %s2009_s18 = scalar_lea.vmem %s2392_s4, %s1492_s15  ;;  %s322_s8 = scalar_lea.vmem [#allocation4], %s1375_s20 }
  0x1e   : > { %1582 = vmatpush3.bf16.msra.mxu0 %v1694_v1  ;;  %s1194_s11 = sshll.u32 %s322_s8, 4  ;;  %s2311_s15 = scalar_lea.hbm %s2393_s5, %s1525_s27  ;;  %s2320_s11 = int_to_ptr.vmem [resolvable:$true] %s1194_s11 }
  0x1f   : > { %1583 = vmatprep.subr.bf16.mxu0 %v1695_v2  ;;  %s2318_s17 = scalar_lea.hbm %s2394_s6, %s1525_s27  ;;  %s1825_s20 = smov [#allocation2]  }
  0x20   : > { %s1716_s12 = sshll.u32 %s1825_s20, 4  ;;  %s1717_s12 = int_to_ptr.vmem [resolvable:$false] %s1716_s12 }
  0x21   : > { %s1718_s14 = scalar_lea.vmem %s1717_s12, 128  ;;  %p1719_p1 = scmp.lt.s32.totalorder %s2313_s30, %s1717_s12 }
  0x22   : > { %1584 = vmatpush3.bf16.msra.mxu0 %v1695_v2 }
  0x25   : > { %1586 = vmatmul.mubr.msk.bf16.vlgmr.msra.gmra.mrb[0].mxu0 %vm481_vm0, %v1697_v3 }
  0x26   : > { %1589 = vmatprep.mubr.msk.bf16.mxu0 %vm481_vm0, %v1698_v4 }
  0x2d   : > { %1590 = vmatmul.mubr.msk.bf16.gmra.mrb[4].mxu0 %vm481_vm0, %v1699_v5 }
  0x2e   : > { %1593 = vmatprep.mubr.msk.bf16.mxu0 %vm481_vm0, %v1700_v6 }
  0x35   : > { %1594 = vmatmul.mubr.msk.bf16.gmra.mrb[8].mxu0 %vm481_vm0, %v1701_v7 }
  0x36   : > { %1597 = vmatprep.mubr.msk.bf16.mxu0 %vm481_vm0, %v1702_v8 }
  0x3d   : > { %1598 = vmatmul.mubr.msk.bf16.gmra.mrb[12].mxu0 %vm481_vm0, %v1703_v9 }
  0x3e   : > { %1601 = vmatprep.mubr.msk.bf16.mxu0 %vm481_vm0, %v1704_v10 }
  0x45   : > { %1602 = vmatmul.mubr.msk.bf16.gmra.mrb[16].mxu0 %vm481_vm0, %v1705_v11 }
  0x46   : > { %1605 = vmatprep.mubr.msk.bf16.mxu0 %vm481_vm0, %v1706_v12 }
  0x4d   : > { %1606 = vmatmul.mubr.msk.bf16.gmra.mrb[20].mxu0 %vm481_vm0, %v1707_v13 }
  0x4e   : > { %1609 = vmatprep.mubr.msk.bf16.mxu0 %vm481_vm0, %v1708_v14 }
  0x55   : > { %1610 = vmatmul.mubr.msk.bf16.gmra.mrb[24].mxu0 %vm481_vm0, %v1709_v15 }
  0x56   : > { %1613 = vmatprep.mubr.msk.bf16.mxu0 %vm481_vm0, %v1710_v16 }
  0x5d   : > { %1614 = vmatmul.mubr.msk.bf16.gmra.mrb[28].mxu0 %vm481_vm0, %v1711_v17 }
  0x5e   : > { %1579 = vmatprep.mubr.msk.bf16.mxu0 %vm481_vm0, %v1999_v19 }
  0xf8   : > { %v2011_v20 = vpop.f32.mrb[0].mxu0 }
  0xf9   : > { %v2013_v21 = vpop.f32.mrb[1].mxu0  ;;  %v1495_v22 = vpack.c.bf16 %v2011_v20, %v2011_v20 }
  0xfa   : > { %v2017_v23 = vpop.f32.mrb[2].mxu0  ;;  %v1493_v24 = vpack.c.bf16 %v2013_v21, %v2013_v21 }
  0xfb   : > { %v692_v25 = vpack.c.bf16 %v2017_v23, %v2011_v20  ;;  %v1496_v26 = vpack.c.bf16 %v2017_v23, %v2017_v23  ;;  %1018 = vrot.lane.b32.xlu1 %v1495_v22, %s1824_s13  ;;  %984 = vst.msk [vmem:[%s2009_s18 + $0x8] sm:$0xf] %vm981_vm1, %v1495_v22  ;;  %v2028_v27 = vpop.f32.mrb[3].mxu0 }
  0xfc   : > { %v691_v28 = vpack.c.bf16 %v2028_v27, %v2013_v21  ;;  %v1494_v29 = vpack.c.bf16 %v2028_v27, %v2028_v27  ;;  %1014 = vrot.lane.b32.xlu0 %v1493_v24, %s1824_s13  ;;  %982 = vst.msk [vmem:[%s2009_s18] sm:$0xf] %vm981_vm1, %v1493_v24 }
  0xfd   : > { %985 = vst.msk [vmem:[%s2009_s18 + $0xc] sm:$0xf] %vm981_vm1, %v1496_v26  ;;  %v715_v17 = vsel %vm481_vm0, %v692_v25, 0 }
  0xfe   : > { %983 = vst.msk [vmem:[%s2009_s18 + $0x4] sm:$0xf] %vm981_vm1, %v1494_v29  ;;  %v712_v6 = vsel %vm481_vm0, %v691_v28, 0 }
  0xff   : > { %1020 = vrot.lane.b32.xlu1 %v1496_v26, %s1824_s13 }
 0x100   : > { %1016 = vrot.lane.b32.xlu0 %v1494_v29, %s1824_s13  ;;  %v2043_v30 = vpop.f32.mrb[4].mxu0 }
 0x101   : > { %v1499_v31 = vpack.c.bf16 %v2043_v30, %v2043_v30  ;;  %v2047_v32 = vpop.f32.mrb[5].mxu0 }
 0x102   : > { %v1497_v33 = vpack.c.bf16 %v2047_v32, %v2047_v32  ;;  %v2051_v34 = vpop.f32.mrb[6].mxu0 }
 0x103   : > { %988 = vst.msk [vmem:[%s2009_s18 + $0x18] sm:$0xf] %vm981_vm1, %v1499_v31  ;;  %v694_v35 = vpack.c.bf16 %v2051_v34, %v2043_v30  ;;  %v1500_v36 = vpack.c.bf16 %v2051_v34, %v2051_v34  ;;  %v2059_v37 = vpop.f32.mrb[7].mxu0 }
 0x104   : > { %986 = vst.msk [vmem:[%s2009_s18 + $0x10] sm:$0xf] %vm981_vm1, %v1497_v33  ;;  %v693_v38 = vpack.c.bf16 %v2059_v37, %v2047_v32  ;;  %v1498_v39 = vpack.c.bf16 %v2059_v37, %v2059_v37  ;;  %1026 = vrot.lane.b32.xlu0 %v1499_v31, %s1824_s13 }
 0x105   : > { %989 = vst.msk [vmem:[%s2009_s18 + $0x1c] sm:$0xf] %vm981_vm1, %v1500_v36  ;;  %1028 = vrot.lane.b32.xlu1 %v1500_v36, %s1824_s13 }
 0x106   : > { %987 = vst.msk [vmem:[%s2009_s18 + $0x14] sm:$0xf] %vm981_vm1, %v1498_v39  ;;  %v718_v31 = vsel %vm481_vm0, %v693_v38, 0 }
 0x108   : > { %1022 = vrot.lane.b32.xlu0 %v1497_v33, %s1824_s13  ;;  %v2074_v40 = vpop.f32.mrb[8].mxu0 }
 0x109   : > { %v1503_v41 = vpack.c.bf16 %v2074_v40, %v2074_v40  ;;  %1024 = vrot.lane.b32.xlu1 %v1498_v39, %s1824_s13  ;;  %v2079_v42 = vpop.f32.mrb[9].mxu0 }
 0x10a   : > { %v1501_v43 = vpack.c.bf16 %v2079_v42, %v2079_v42  ;;  %v2083_v44 = vpop.f32.mrb[10].mxu0 }
 0x10b   : > { %992 = vst.msk [vmem:[%s2009_s18 + $0x28] sm:$0xf] %vm981_vm1, %v1503_v41  ;;  %v696_v45 = vpack.c.bf16 %v2083_v44, %v2074_v40  ;;  %v1504_v46 = vpack.c.bf16 %v2083_v44, %v2083_v44  ;;  %v2091_v47 = vpop.f32.mrb[11].mxu0 }
 0x10c   : > { %990 = vst.msk [vmem:[%s2009_s18 + $0x20] sm:$0xf] %vm981_vm1, %v1501_v43  ;;  %v695_v48 = vpack.c.bf16 %v2091_v47, %v2079_v42  ;;  %v1502_v49 = vpack.c.bf16 %v2091_v47, %v2091_v47  ;;  %1034 = vrot.lane.b32.xlu0 %v1503_v41, %s1824_s13 }
 0x10d   : > { %993 = vst.msk [vmem:[%s2009_s18 + $0x2c] sm:$0xf] %vm981_vm1, %v1504_v46  ;;  %1036 = vrot.lane.b32.xlu1 %v1504_v46, %s1824_s13  ;;  %v727_v34 = vsel %vm481_vm0, %v696_v45, 0 }
 0x10e   : > { %991 = vst.msk [vmem:[%s2009_s18 + $0x24] sm:$0xf] %vm981_vm1, %v1502_v49  ;;  %v724_v30 = vsel %vm481_vm0, %v695_v48, 0 }
 0x110   : > { %1030 = vrot.lane.b32.xlu0 %v1501_v43, %s1824_s13  ;;  %v2106_v50 = vpop.f32.mrb[12].mxu0 }
 0x111   : > { %v1507_v51 = vpack.c.bf16 %v2106_v50, %v2106_v50  ;;  %1032 = vrot.lane.b32.xlu1 %v1502_v49, %s1824_s13  ;;  %v2111_v52 = vpop.f32.mrb[13].mxu0 }
 0x112   : > { %v1505_v53 = vpack.c.bf16 %v2111_v52, %v2111_v52  ;;  %v2115_v54 = vpop.f32.mrb[14].mxu0 }
 0x113   : > { %996 = vst.msk [vmem:[%s2009_s18 + $0x38] sm:$0xf] %vm981_vm1, %v1507_v51  ;;  %v698_v55 = vpack.c.bf16 %v2115_v54, %v2106_v50  ;;  %v1508_v56 = vpack.c.bf16 %v2115_v54, %v2115_v54  ;;  %v2123_v57 = vpop.f32.mrb[15].mxu0 }
 0x114   : > { %994 = vst.msk [vmem:[%s2009_s18 + $0x30] sm:$0xf] %vm981_vm1, %v1505_v53  ;;  %v697_v58 = vpack.c.bf16 %v2123_v57, %v2111_v52  ;;  %v1506_v59 = vpack.c.bf16 %v2123_v57, %v2123_v57  ;;  %1042 = vrot.lane.b32.xlu0 %v1507_v51, %s1824_s13  ;;  %v721_v51 = vsel %vm481_vm0, %v694_v35, 0 }
 0x115   : > { %997 = vst.msk [vmem:[%s2009_s18 + $0x3c] sm:$0xf] %vm981_vm1, %v1508_v56  ;;  %1044 = vrot.lane.b32.xlu1 %v1508_v56, %s1824_s13  ;;  %v733_v40 = vsel %vm481_vm0, %v698_v55, 0 }
 0x116   : > { %995 = vst.msk [vmem:[%s2009_s18 + $0x34] sm:$0xf] %vm981_vm1, %v1506_v59  ;;  %v730_v35 = vsel %vm481_vm0, %v697_v58, 0 }
 0x118   : > { %1038 = vrot.lane.b32.xlu0 %v1505_v53, %s1824_s13  ;;  %v1603_v60 = vpop.f32.mrb[16].mxu0 }
 0x119   : > { %v1511_v61 = vpack.c.bf16 %v1603_v60, %v1603_v60  ;;  %1040 = vrot.lane.b32.xlu1 %v1506_v59, %s1824_s13  ;;  %v628_v62 = vpop.f32.mrb[17].mxu0 }
 0x11a   : > { %v1509_v63 = vpack.c.bf16 %v628_v62, %v628_v62  ;;  %v1604_v0 = vpop.f32.mrb[18].mxu0 }
 0x11b   : > { %1000 = vst.msk [vmem:[%s2009_s18 + $0x48] sm:$0xf] %vm981_vm1, %v1511_v61  ;;  %v700_v1 = vpack.c.bf16 %v1604_v0, %v1603_v60  ;;  %v1512_v2 = vpack.c.bf16 %v1604_v0, %v1604_v0  ;;  %v631_v3 = vpop.f32.mrb[19].mxu0 }
 0x11c   : > { %998 = vst.msk [vmem:[%s2009_s18 + $0x40] sm:$0xf] %vm981_vm1, %v1509_v63  ;;  %v1510_v4 = vpack.c.bf16 %v631_v3, %v631_v3  ;;  %1050 = vrot.lane.b32.xlu0 %v1511_v61, %s1824_s13  ;;  %v699_v5 = vpack.c.bf16 %v631_v3, %v628_v62 }
 0x11d   : > { %1001 = vst.msk [vmem:[%s2009_s18 + $0x4c] sm:$0xf] %vm981_vm1, %v1512_v2  ;;  %1052 = vrot.lane.b32.xlu1 %v1512_v2, %s1824_s13 }
 0x11e   : > { %999 = vst.msk [vmem:[%s2009_s18 + $0x44] sm:$0xf] %vm981_vm1, %v1510_v4  ;;  %1617 = vmatprep.subr.msk.bf16.mxu1 %vm481_vm0, %v699_v5  ;;  %1625 = vmatprep.subr.msk.bf16.mxu0 %vm481_vm0, %v699_v5 }
 0x11f   : > { %1546 = vmatpush3.bf16.xpose.msra.mxu1 %v712_v6  ;;  %1564 = vmatpush3.bf16.xpose.msra.mxu0 %v712_v6 }
 0x120   : > { %1046 = vrot.lane.b32.xlu0 %v1509_v63, %s1824_s13  ;;  %1618 = vmatprep.subr.msk.bf16.mxu1 %vm481_vm0, %v700_v1  ;;  %v1607_v7 = vpop.f32.mrb[20].mxu0 }
 0x121   : > { %1626 = vmatprep.subr.msk.bf16.mxu0 %vm481_vm0, %v700_v1  ;;  %1048 = vrot.lane.b32.xlu1 %v1510_v4, %s1824_s13  ;;  %v1515_v8 = vpack.c.bf16 %v1607_v7, %v1607_v7  ;;  %v644_v9 = vpop.f32.mrb[21].mxu0 }
 0x122   : > { %v1513_v10 = vpack.c.bf16 %v644_v9, %v644_v9  ;;  %v1608_v11 = vpop.f32.mrb[22].mxu0 }
 0x123   : > { %1004 = vst.msk [vmem:[%s2009_s18 + $0x58] sm:$0xf] %vm981_vm1, %v1515_v8  ;;  %v702_v12 = vpack.c.bf16 %v1608_v11, %v1607_v7  ;;  %v1516_v13 = vpack.c.bf16 %v1608_v11, %v1608_v11  ;;  %v647_v14 = vpop.f32.mrb[23].mxu0 }
 0x124   : > { %1002 = vst.msk [vmem:[%s2009_s18 + $0x50] sm:$0xf] %vm981_vm1, %v1513_v10  ;;  %1058 = vrot.lane.b32.xlu0 %v1515_v8, %s1824_s13  ;;  %v701_v15 = vpack.c.bf16 %v647_v14, %v644_v9  ;;  %v1514_v16 = vpack.c.bf16 %v647_v14, %v647_v14 }
 0x125   : > { %1005 = vst.msk [vmem:[%s2009_s18 + $0x5c] sm:$0xf] %vm981_vm1, %v1516_v13  ;;  %1060 = vrot.lane.b32.xlu1 %v1516_v13, %s1824_s13 }
 0x126   : > { %1003 = vst.msk [vmem:[%s2009_s18 + $0x54] sm:$0xf] %vm981_vm1, %v1514_v16 }
 0x127   : > { %1548 = vmatpush3.bf16.xpose.msra.mxu1 %v715_v17  ;;  %1566 = vmatpush3.bf16.xpose.msra.mxu0 %v715_v17 }
 0x128   : > { %1054 = vrot.lane.b32.xlu0 %v1513_v10, %s1824_s13  ;;  %1619 = vmatprep.subr.msk.bf16.mxu1 %vm481_vm0, %v701_v15  ;;  %v1611_v21 = vpop.f32.mrb[24].mxu0 }
 0x129   : > { %1056 = vrot.lane.b32.xlu1 %v1514_v16, %s1824_s13  ;;  %1627 = vmatprep.subr.msk.bf16.mxu0 %vm481_vm0, %v701_v15  ;;  %v1519_v22 = vpack.c.bf16 %v1611_v21, %v1611_v21  ;;  %v660_v20 = vpop.f32.mrb[25].mxu0 }
 0x12a   : > { %v1517_v23 = vpack.c.bf16 %v660_v20, %v660_v20  ;;  %v1612_v24 = vpop.f32.mrb[26].mxu0 }
 0x12b   : > { %1008 = vst.msk [vmem:[%s2009_s18 + $0x68] sm:$0xf] %vm981_vm1, %v1519_v22  ;;  %v704_v25 = vpack.c.bf16 %v1612_v24, %v1611_v21  ;;  %v1520_v26 = vpack.c.bf16 %v1612_v24, %v1612_v24  ;;  %v663_v27 = vpop.f32.mrb[27].mxu0 }
 0x12c   : > { %1006 = vst.msk [vmem:[%s2009_s18 + $0x60] sm:$0xf] %vm981_vm1, %v1517_v23  ;;  %1066 = vrot.lane.b32.xlu0 %v1519_v22, %s1824_s13  ;;  %v703_v28 = vpack.c.bf16 %v663_v27, %v660_v20  ;;  %v1518_v29 = vpack.c.bf16 %v663_v27, %v663_v27 }
 0x12d   : > { %1009 = vst.msk [vmem:[%s2009_s18 + $0x6c] sm:$0xf] %vm981_vm1, %v1520_v26  ;;  %1068 = vrot.lane.b32.xlu1 %v1520_v26, %s1824_s13 }
 0x12e   : > { %1007 = vst.msk [vmem:[%s2009_s18 + $0x64] sm:$0xf] %vm981_vm1, %v1518_v29 }
 0x12f   : > { %1550 = vmatpush3.bf16.xpose.msra.mxu1 %v718_v31  ;;  %1568 = vmatpush3.bf16.xpose.msra.mxu0 %v718_v31 }
 0x130   : > { %1620 = vmatprep.subr.msk.bf16.mxu1 %vm481_vm0, %v702_v12  ;;  %1628 = vmatprep.subr.msk.bf16.mxu0 %vm481_vm0, %v702_v12  ;;  %v1615_v33 = vpop.f32.mrb[28].mxu0 }
 0x131   : > { %1062 = vrot.lane.b32.xlu0 %v1517_v23, %s1824_s13  ;;  %1064 = vrot.lane.b32.xlu1 %v1518_v29, %s1824_s13  ;;  %v1523_v36 = vpack.c.bf16 %v1615_v33, %v1615_v33  ;;  %v676_v32 = vpop.f32.mrb[29].mxu0 }
 0x132   : > { %v1521_v37 = vpack.c.bf16 %v676_v32, %v676_v32  ;;  %v1616_v38 = vpop.f32.mrb[30].mxu0 }
 0x133   : > { %1012 = vst.msk [vmem:[%s2009_s18 + $0x78] sm:$0xf] %vm981_vm1, %v1523_v36  ;;  %v706_v39 = vpack.c.bf16 %v1616_v38, %v1615_v33  ;;  %v1524_v41 = vpack.c.bf16 %v1616_v38, %v1616_v38  ;;  %v679_v43 = vpop.f32.mrb[31].mxu0 }
 0x134   : > { %1010 = vst.msk [vmem:[%s2009_s18 + $0x70] sm:$0xf] %vm981_vm1, %v1521_v37  ;;  %v705_v46 = vpack.c.bf16 %v679_v43, %v676_v32  ;;  %v1522_v49 = vpack.c.bf16 %v679_v43, %v679_v43 }
 0x135   : > { %1013 = vst.msk [vmem:[%s2009_s18 + $0x7c] sm:$0xf] %vm981_vm1, %v1524_v41  ;;  %1070 = vrot.lane.b32.xlu0 %v1521_v37, %s1824_s13 }
 0x136   : > { %1011 = vst.msk [vmem:[%s2009_s18 + $0x74] sm:$0xf] %vm981_vm1, %v1522_v49  ;;  %1072 = vrot.lane.b32.xlu1 %v1522_v49, %s1824_s13 }
 0x137   : > { %1552 = vmatpush3.bf16.xpose.msra.mxu1 %v721_v51  ;;  %1570 = vmatpush3.bf16.xpose.msra.mxu0 %v721_v51 }
 0x138   : > { %1621 = vmatprep.subr.msk.bf16.mxu1 %vm481_vm0, %v703_v28  ;;  %1629 = vmatprep.subr.msk.bf16.mxu0 %vm481_vm0, %v703_v28 }
 0x139   : > { %1074 = vrot.lane.b32.xlu0 %v1523_v36, %s1824_s13 }
 0x13a   : > { %1076 = vrot.lane.b32.xlu1 %v1524_v41, %s1824_s13  ;;  %s1712_s13 = scalar_lea.vmem %s2313_s30, 64 }
 0x13b   : > { %p1713_p12 = scmp.ne.s32.totalorder %s2313_s30, %s1712_s13  ;;  %p1720_p2 = scmp.lt.s32.totalorder %s1718_s14, %s1712_s13 }
 0x13d   : > { %p1714_p13 = pnand %p1713_p12, %p1902_p4  ;;  %p1721_p3 = por %p1720_p2, %p1719_p1 }
 0x13f   : > { %1554 = vmatpush3.bf16.xpose.msra.mxu1 %v724_v30  ;;  %1572 = vmatpush3.bf16.xpose.msra.mxu0 %v724_v30  ;;  %p1715_p0 = pneg %p1714_p13 }
 0x140   : > { %1622 = vmatprep.subr.msk.bf16.mxu1 %vm481_vm0, %v704_v25  ;;  %1630 = vmatprep.subr.msk.bf16.mxu0 %vm481_vm0, %v704_v25 }
 0x141   : > { %p1722_p5 = pnand %p1721_p3, %p1715_p0 }
 0x147   : > { %1556 = vmatpush3.bf16.xpose.msra.mxu1 %v727_v34  ;;  %1574 = vmatpush3.bf16.xpose.msra.mxu0 %v727_v34 }
 0x148   : > { %1623 = vmatprep.subr.msk.bf16.mxu1 %vm481_vm0, %v705_v46  ;;  %1631 = vmatprep.subr.msk.bf16.mxu0 %vm481_vm0, %v705_v46 }
 0x14f   : > { %1558 = vmatpush3.bf16.xpose.msra.mxu1 %v730_v35  ;;  %1576 = vmatpush3.bf16.xpose.msra.mxu0 %v730_v35 }
 0x150   : > { %1624 = vmatprep.subr.msk.bf16.mxu1 %vm481_vm0, %v706_v39  ;;  %1632 = vmatprep.subr.msk.bf16.mxu0 %vm481_vm0, %v706_v39 }
 0x157   : > { %1560 = vmatpush3.bf16.xpose.msra.mxu1 %v733_v40  ;;  %1578 = vmatpush3.bf16.xpose.msra.mxu0 %v733_v40 }
 0x15e   : > { %1562 = vmatmul.mubr.msk.bf16.vlgmr.msra.gmra.mrb[0].mxu1 %vm481_vm0, %v1997_v18  ;;  %1580 = vmatmul.mubr.msk.bf16.vlgmr.msra.gmra.mrb[32].mxu0 %vm481_vm0, %v1999_v19 }
 0x16d   : > { %v1019_v42 = vpop.permute.xlu1 %1018 }
 0x16e   : > { %1453 = vst.msk [vmem:[%s2009_s18 + $0x88] sm:$0xf] %vm981_vm1, %v1019_v42  ;;  %v1015_v44 = vpop.permute.xlu0 %1014 }
 0x16f   : > { %1451 = vst.msk [vmem:[%s2009_s18 + $0x80] sm:$0xf] %vm981_vm1, %v1015_v44 }
 0x171   : > { %v1021_v45 = vpop.permute.xlu1 %1020 }
 0x172   : > { %1454 = vst.msk [vmem:[%s2009_s18 + $0x8c] sm:$0xf] %vm981_vm1, %v1021_v45  ;;  %v1017_v47 = vpop.permute.xlu0 %1016 }
 0x173   : > { %1452 = vst.msk [vmem:[%s2009_s18 + $0x84] sm:$0xf] %vm981_vm1, %v1017_v47 }
 0x176   : > { %v1027_v18 = vpop.permute.xlu0 %1026 }
 0x177   : > { %1457 = vst.msk [vmem:[%s2009_s18 + $0x98] sm:$0xf] %vm981_vm1, %v1027_v18  ;;  %v1029_v19 = vpop.permute.xlu1 %1028 }
 0x178   : > { %1458 = vst.msk [vmem:[%s2009_s18 + $0x9c] sm:$0xf] %vm981_vm1, %v1029_v19 }
 0x17a   : > { %v1023_v48 = vpop.permute.xlu0 %1022 }
 0x17b   : > { %1455 = vst.msk [vmem:[%s2009_s18 + $0x90] sm:$0xf] %vm981_vm1, %v1023_v48  ;;  %v1025_v50 = vpop.permute.xlu1 %1024 }
 0x17c   : > { %1456 = vst.msk [vmem:[%s2009_s18 + $0x94] sm:$0xf] %vm981_vm1, %v1025_v50 }
 0x17e   : > { %v1035_v52 = vpop.permute.xlu0 %1034 }
 0x17f   : > { %1461 = vst.msk [vmem:[%s2009_s18 + $0xa8] sm:$0xf] %vm981_vm1, %v1035_v52  ;;  %v1037_v53 = vpop.permute.xlu1 %1036 }
 0x180   : > { %1462 = vst.msk [vmem:[%s2009_s18 + $0xac] sm:$0xf] %vm981_vm1, %v1037_v53 }
 0x182   : > { %v1031_v54 = vpop.permute.xlu0 %1030 }
 0x183   : > { %1459 = vst.msk [vmem:[%s2009_s18 + $0xa0] sm:$0xf] %vm981_vm1, %v1031_v54  ;;  %v1033_v55 = vpop.permute.xlu1 %1032 }
 0x184   : > { %1460 = vst.msk [vmem:[%s2009_s18 + $0xa4] sm:$0xf] %vm981_vm1, %v1033_v55 }
 0x186   : > { %v1043_v56 = vpop.permute.xlu0 %1042 }
 0x187   : > { %1465 = vst.msk [vmem:[%s2009_s18 + $0xb8] sm:$0xf] %vm981_vm1, %v1043_v56  ;;  %v1045_v57 = vpop.permute.xlu1 %1044 }
 0x188   : > { %1466 = vst.msk [vmem:[%s2009_s18 + $0xbc] sm:$0xf] %vm981_vm1, %v1045_v57 }
 0x18a   : > { %v1039_v58 = vpop.permute.xlu0 %1038 }
 0x18b   : > { %1463 = vst.msk [vmem:[%s2009_s18 + $0xb0] sm:$0xf] %vm981_vm1, %v1039_v58  ;;  %v1041_v59 = vpop.permute.xlu1 %1040 }
 0x18c   : > { %1464 = vst.msk [vmem:[%s2009_s18 + $0xb4] sm:$0xf] %vm981_vm1, %v1041_v59 }
 0x18e   : > { %v1051_v60 = vpop.permute.xlu0 %1050 }
 0x18f   : > { %1469 = vst.msk [vmem:[%s2009_s18 + $0xc8] sm:$0xf] %vm981_vm1, %v1051_v60  ;;  %v1053_v61 = vpop.permute.xlu1 %1052 }
 0x190   : > { %1470 = vst.msk [vmem:[%s2009_s18 + $0xcc] sm:$0xf] %vm981_vm1, %v1053_v61 }
 0x192   : > { %v1047_v62 = vpop.permute.xlu0 %1046 }
 0x193   : > { %1467 = vst.msk [vmem:[%s2009_s18 + $0xc0] sm:$0xf] %vm981_vm1, %v1047_v62  ;;  %v1049_v63 = vpop.permute.xlu1 %1048 }
 0x194   : > { %1468 = vst.msk [vmem:[%s2009_s18 + $0xc4] sm:$0xf] %vm981_vm1, %v1049_v63 }
 0x196   : > { %v1059_v0 = vpop.permute.xlu0 %1058 }
 0x197   : > { %1473 = vst.msk [vmem:[%s2009_s18 + $0xd8] sm:$0xf] %vm981_vm1, %v1059_v0  ;;  %v1061_v1 = vpop.permute.xlu1 %1060 }
 0x198   : > { %1474 = vst.msk [vmem:[%s2009_s18 + $0xdc] sm:$0xf] %vm981_vm1, %v1061_v1 }
 0x19a   : > { %v1055_v2 = vpop.permute.xlu0 %1054 }
 0x19b   : > { %1471 = vst.msk [vmem:[%s2009_s18 + $0xd0] sm:$0xf] %vm981_vm1, %v1055_v2  ;;  %v1057_v3 = vpop.permute.xlu1 %1056 }
 0x19c   : > { %1472 = vst.msk [vmem:[%s2009_s18 + $0xd4] sm:$0xf] %vm981_vm1, %v1057_v3 }
 0x19e   : > { %v1067_v4 = vpop.permute.xlu0 %1066 }
 0x19f   : > { %1477 = vst.msk [vmem:[%s2009_s18 + $0xe8] sm:$0xf] %vm981_vm1, %v1067_v4  ;;  %v1069_v5 = vpop.permute.xlu1 %1068 }
 0x1a0   : > { %1478 = vst.msk [vmem:[%s2009_s18 + $0xec] sm:$0xf] %vm981_vm1, %v1069_v5 }
 0x1a3   : > { %v1063_v6 = vpop.permute.xlu0 %1062  ;;  %v1065_v7 = vpop.permute.xlu1 %1064 }
 0x1a4   : > { %1475 = vst.msk [vmem:[%s2009_s18 + $0xe0] sm:$0xf] %vm981_vm1, %v1063_v6  ;;  %1476 = vst.msk [vmem:[%s2009_s18 + $0xe4] sm:$0xf] %vm981_vm1, %v1065_v7 }
 0x1a7   : > { %v1071_v8 = vpop.permute.xlu0 %1070 }
 0x1a8   : > { %1479 = vst.msk [vmem:[%s2009_s18 + $0xf0] sm:$0xf] %vm981_vm1, %v1071_v8  ;;  %v1073_v9 = vpop.permute.xlu1 %1072 }
 0x1a9   : > { %1480 = vst.msk [vmem:[%s2009_s18 + $0xf4] sm:$0xf] %vm981_vm1, %v1073_v9 }
 0x1ab   : > { %v1075_v10 = vpop.permute.xlu0 %1074 }
 0x1ac   : > { %1481 = vst.msk [vmem:[%s2009_s18 + $0xf8] sm:$0xf] %vm981_vm1, %v1075_v10  ;;  %v1077_v11 = vpop.permute.xlu1 %1076 }
 0x1ad   : > { %1482 = vst.msk [vmem:[%s2009_s18 + $0xfc] sm:$0xf] %vm981_vm1, %v1077_v11  ;;  %s1153_s18 = scalar_lea.sflag [#allocation3], %s2304_s19 }
 0x231   : > { %v793_v12 = vpop.f32.mrb[0].mxu1  ;;  %v850_v13 = vpop.f32.mrb[32].mxu0 }
 0x232   : > { %v795_v14 = vpop.f32.mrb[1].mxu1  ;;  %v852_v15 = vpop.f32.mrb[33].mxu0 }
 0x233   : > { %v802_v16 = vcombine.low %v793_v12, %v795_v14  ;;  %v859_v17 = vcombine.low %v850_v13, %v852_v15  ;;  %v797_v21 = vpop.f32.mrb[2].mxu1  ;;  %v854_v22 = vpop.f32.mrb[34].mxu0 }
 0x234   : > { %v798_v20 = vpop.f32.mrb[3].mxu1  ;;  %v855_v23 = vpop.f32.mrb[35].mxu0 }
 0x235   : > { %1416 = vst.sshfl [vmem:[%s315_s28] sm:$0x33 pattern:$0x76325410] %v802_v16  ;;  %1418 = vst.sshfl [vmem:[%s322_s8] sm:$0x33 pattern:$0x76325410] %v859_v17 }
 0x236   : > { %1725 = shalt.err (!%p1722_p5)
}
 0x237   : > { %s1726_s27 = scalar_lea.hbm %s2311_s15, 64  ;;  %s1730_s24 = scalar_lea.hbm %s2393_s5, 128 }
 0x238   : > { %p1727_p6 = scmp.ne.s32.totalorder %s2311_s15, %s1726_s27  ;;  %p1731_p10 = scmp.lt.u32.totalorder %s2311_s15, %s2393_s5 }
 0x239   : > { %p1732_p11 = scmp.lt.u32.totalorder %s1730_s24, %s1726_s27  ;;  %p1734_p13 = scmp.lt.u32.totalorder %s1726_s27, %s2311_s15 }
 0x23a   : > { %p1728_p7 = pnand %p1727_p6, %p1902_p4 }
 0x23b   : > { %p1733_p12 = por %p1732_p11, %p1731_p10 }
 0x23c   : > { %p1729_p9 = pneg %p1728_p7 }
 0x23d   : > { %p1735_p0 = por %p1734_p13, %p1733_p12 }
 0x23f   : > { %p1736_p1 = pnand %p1735_p0, %p1729_p9 }
 0x241   : > { %1739 = shalt.err (!%p1736_p1)
}
 0x242   : > { %1633 = dma.vmem_to_hbm [thread:$0]  (%p1902_p4), %s2313_s30, 64, %s2311_s15, %s1153_s18  }
 0x243   : > { %s1158_s13 = scalar_lea.sflag [#allocation5], %s2304_s19  ;;  %s1740_s12 = scalar_lea.vmem %s2320_s11, 64 }
 0x244   : > { %p1741_p2 = scmp.ne.s32.totalorder %s2320_s11, %s1740_s12  ;;  %s1826_s14 = smov [#allocation4]  }
 0x245   : > { %s1744_s27 = sshll.u32 %s1826_s14, 4  ;;  %s1745_s27 = int_to_ptr.vmem [resolvable:$false] %s1744_s27 }
 0x246   : > { %p1742_p3 = pnand %p1741_p2, %p1902_p4  ;;  %s1746_s28 = scalar_lea.vmem %s1745_s27, 128 }
 0x247   : > { %p1747_p6 = scmp.lt.s32.totalorder %s2320_s11, %s1745_s27  ;;  %p1748_p7 = scmp.lt.s32.totalorder %s1746_s28, %s1740_s12 }
 0x248   : > { %p1743_p5 = pneg %p1742_p3 }
 0x249   : > { %p1749_p9 = por %p1748_p7, %p1747_p6 }
 0x24b   : > { %p1750_p10 = pnand %p1749_p9, %p1743_p5 }
 0x24d   : > { %1753 = shalt.err (!%p1750_p10)
}
 0x24e   : > { %s1754_s19 = scalar_lea.hbm %s2318_s17, 64  ;;  %s1758_s18 = scalar_lea.hbm %s2394_s6, 128 }
 0x24f   : > { %p1755_p11 = scmp.ne.s32.totalorder %s2318_s17, %s1754_s19  ;;  %p1759_p0 = scmp.lt.u32.totalorder %s2318_s17, %s2394_s6 }
 0x250   : > { %p1760_p1 = scmp.lt.u32.totalorder %s1758_s18, %s1754_s19  ;;  %p1762_p3 = scmp.lt.u32.totalorder %s1754_s19, %s2318_s17 }
 0x251   : > { %p1756_p12 = pnand %p1755_p11, %p1902_p4 }
 0x252   : > { %p1761_p2 = por %p1760_p1, %p1759_p0 }
 0x253   : > { %p1757_p13 = pneg %p1756_p12 }
 0x254   : > { %p1763_p5 = por %p1762_p3, %p1761_p2 }
 0x256   : > { %p1764_p6 = pnand %p1763_p5, %p1757_p13 }
 0x258   : > { %1767 = shalt.err (!%p1764_p6)
}
 0x259   : > { %1634 = dma.vmem_to_hbm [thread:$0]  (%p1902_p4), %s2320_s11, 64, %s2318_s17, %s1158_s13  }
 0x25a PF: > { %p1644_p7 = scmp.ge.s32.totalorder %s1822_s26, 2  ;;  %s1218_s16 = sand.u32 1, %s1802_s21  }
 0x25b   : > { %s1219_s20 = scalar_lea.sflag [#allocation3], %s1218_s16 }
 0x25c   : > { %p1638_p9 = pnand %p1644_p7, %p1909_p8 }
 0x25e   : > { %1793 = dma.done.wait (!%p1638_p9), %s1219_s20, 64  }
 0x25f   : > { %1795 = vsyncadd (!%p1638_p9), %s1219_s20, 4294967232  ;;  %s1228_s12 = scalar_lea.sflag [#allocation5], %s1218_s16 }
 0x260   : > { %1797 = dma.done.wait (!%p1638_p9), %s1228_s12, 64  }
 0x261   : > { %1799 = vsyncadd (!%p1638_p9), %s1228_s12, 4294967232  ;;  %s23_s26 = sadd.s32 1, %s1822_s26   ;;  %s2397_s21 = smov %s1806_s22 }
 0x262   : > { %p20_p10 = scmp.ge.s32.totalorder %s23_s26, 4   ;;  %s2398_s22 = smov %s1810_s23 }
 0x263   : > { %s2399_s23 = smov %s1915_s10  ;;  %s2400_s24 = smov %s1818_s25 }
 0x264   : > { %s2401_s25 = smov %s2403_s29  ;;  %22 = sbr.rel (!%p20_p10) target bundleno = 6 (0x6), region = 110 }
 0x26b   :  { %1233 = vsyncpa [#allocation3], 1 }
 0x26c   :  { %1235 = vsyncpa [#allocation3 + $0x1], 1 }
 0x26d   :  { %1236 = vsyncpa [#allocation5], 1 }
 0x26e   :  { %1238 = vsyncpa [#allocation5 + $0x1], 1 }

</bundles_post_ra>
